<compile_context>
chip_gen: v5e
topology: v5e:2x2
jax: 0.10.0
libtpu: 0.0.40
codegen_flags: <defaults>
</compile_context>

<pallas_src>
import functools

import jax
import jax.numpy as jnp
from jax.experimental import pallas as pl
from jax.experimental.pallas import tpu as pltpu


def _round_up(x, m):
    return ((x + m - 1) // m) * m


def _conv_bn_relu_kernel(p_ref, w_ref, shift_ref, o_ref, acc_ref, *, has_relu):
    # p_ref:     (TM, TK)  bf16 im2col patch tile
    # w_ref:     (TK, TN)  bf16 conv weight with BN scale folded in
    # shift_ref: (1, TN)   f32  beta - mean * scale
    # o_ref:     (TM, TN)  f32  output tile (TN is a multiple of 128 lanes)
    # acc_ref:   (TM, TN)  f32  VMEM accumulator, resident across the K axis
    k = pl.program_id(2)

    @pl.when(k == 0)
    def _():
        acc_ref[...] = jnp.zeros_like(acc_ref)

    acc_ref[...] += jnp.dot(p_ref[...], w_ref[...],
                            preferred_element_type=jnp.float32)

    @pl.when(k == pl.num_programs(2) - 1)
    def _():
        y = acc_ref[...] + shift_ref[...]
        if has_relu:
            y = jnp.maximum(y, 0.0)
        o_ref[...] = y.astype(o_ref.dtype)


def conv_bn_relu(x_nchw, weight_oihw, bn_gamma, bn_beta, bn_mean, bn_var,
                 *, stride=1, padding=0, eps=1e-5, has_bn=True, has_relu=True,
                 tm=512, tn=128, tk=512):
    """Forward pass of Conv_BN_ReLU (groups=1, bias=False, eval-mode BN)."""
    n, c, h, w = x_nchw.shape
    oc, ic, kh, kw = weight_oihw.shape
    assert ic == c, "groups != 1 not supported"

    ho = (h + 2 * padding - kh) // stride + 1
    wo = (w + 2 * padding - kw) // stride + 1

    # ---- glue: NCHW -> NHWC, pad, im2col (bf16) ---------------------------
    x = jnp.transpose(x_nchw, (0, 2, 3, 1)).astype(jnp.bfloat16)   # (N,H,W,C)
    x = jnp.pad(x, ((0, 0), (padding, padding), (padding, padding), (0, 0)))
    cols = []
    for dy in range(kh):
        for dx in range(kw):
            cols.append(x[:, dy:dy + stride * ho:stride,
                          dx:dx + stride * wo:stride, :])           # (N,Ho,Wo,C)
    patches = jnp.concatenate(cols, axis=-1)                        # (N,Ho,Wo,kh*kw*C)
    m = n * ho * wo
    kkc = kh * kw * c
    patches = patches.reshape(m, kkc)

    # conv weight (OC, IC, kh, kw) -> (kh, kw, IC, OC) -> (kh*kw*IC, OC),
    # matching the (dy, dx, channel) ordering of the patches.
    w_mat = jnp.transpose(weight_oihw, (2, 3, 1, 0)).reshape(kkc, oc)
    w_mat = w_mat.astype(jnp.float32)

    # Fold BatchNorm (inference) into the weight (scale) and a shift vector.
    if has_bn:
        scale = bn_gamma.astype(jnp.float32) / jnp.sqrt(
            bn_var.astype(jnp.float32) + eps)
        shift = bn_beta.astype(jnp.float32) - bn_mean.astype(jnp.float32) * scale
    else:
        scale = jnp.ones((oc,), jnp.float32)
        shift = jnp.zeros((oc,), jnp.float32)
    w_mat = (w_mat * scale[None, :]).astype(jnp.bfloat16)           # scale folded
    shift = shift.reshape(1, oc)

    # ---- lane/sublane-dense tiling ----------------------------------------
    oc_p = _round_up(oc, 128)                      # output lanes: mult of 128
    tn = min(tn, oc_p)
    if oc_p % tn != 0:
        tn = 128

    tk_eff = min(tk, _round_up(kkc, 128))          # contraction tile: mult of 128
    kkc_p = _round_up(kkc, tk_eff)                 # zero-padded K (zeros are inert)

    tm_eff = min(tm, _round_up(m, 128))            # don't over-pad tiny M
    m_pad = _round_up(m, tm_eff)

    patches = jnp.pad(patches, ((0, m_pad - m), (0, kkc_p - kkc)))
    w_mat = jnp.pad(w_mat, ((0, kkc_p - kkc), (0, oc_p - oc)))
    shift = jnp.pad(shift, ((0, 0), (0, oc_p - oc)))

    # ---- hot path: fused matmul + BN shift + ReLU in Pallas ----------------
    kernel = functools.partial(_conv_bn_relu_kernel, has_relu=has_relu)
    flops = 2 * m_pad * kkc_p * oc_p
    bytes_accessed = (m_pad * kkc_p * 2 + kkc_p * oc_p * 2
                      + oc_p * 4 + m_pad * oc_p * 4)
    cost = pl.CostEstimate(flops=flops, transcendentals=0,
                           bytes_accessed=bytes_accessed)

    out = pl.pallas_call(
        kernel,
        out_shape=jax.ShapeDtypeStruct((m_pad, oc_p), jnp.float32),
        grid_spec=pltpu.PrefetchScalarGridSpec(
            num_scalar_prefetch=0,
            grid=(m_pad // tm_eff, oc_p // tn, kkc_p // tk_eff),
            in_specs=[
                pl.BlockSpec((tm_eff, tk_eff), lambda i, j, k: (i, k)),
                pl.BlockSpec((tk_eff, tn), lambda i, j, k: (k, j)),
                pl.BlockSpec((1, tn), lambda i, j, k: (0, j)),
            ],
            out_specs=pl.BlockSpec((tm_eff, tn), lambda i, j, k: (i, j)),
            scratch_shapes=[pltpu.VMEM((tm_eff, tn), jnp.float32)],
        ),
        compiler_params=pltpu.CompilerParams(
            dimension_semantics=("parallel", "parallel", "arbitrary"),
            vmem_limit_bytes=32 * 1024 * 1024),
        cost_estimate=cost,
    )(patches, w_mat, shift)

    out = out[:m, :oc].reshape(n, ho, wo, oc)        # NHWC, drop padding
    return jnp.transpose(out, (0, 3, 1, 2))          # back to NCHW


def _reference_bf16(x_nchw, weight_oihw, gamma, beta, mean, var,
                    *, stride, padding, eps, has_relu):
    """Reference with the same bf16 operand rounding + f32 accumulation."""
    scale = gamma / jnp.sqrt(var + eps)
    shift = beta - mean * scale
    w_folded = (weight_oihw * scale[:, None, None, None]).astype(jnp.bfloat16)
    y = jax.lax.conv_general_dilated(
        x_nchw.astype(jnp.bfloat16), w_folded,
        window_strides=(stride, stride),
        padding=[(padding, padding), (padding, padding)],
        dimension_numbers=("NCHW", "OIHW", "NCHW"),
        preferred_element_type=jnp.float32)
    y = y + shift.reshape(1, -1, 1, 1)
    if has_relu:
        y = jnp.maximum(y, 0.0)
    return y


def _reference_f32(x_nchw, weight_oihw, gamma, beta, mean, var,
                   *, stride, padding, eps, has_relu):
    """Pure fp32 reference of the original module (eval-mode BN)."""
    y = jax.lax.conv_general_dilated(
        x_nchw, weight_oihw,
        window_strides=(stride, stride),
        padding=[(padding, padding), (padding, padding)],
        dimension_numbers=("NCHW", "OIHW", "NCHW"))
    s = (gamma / jnp.sqrt(var + eps)).reshape(1, -1, 1, 1)
    b = (beta - mean * gamma / jnp.sqrt(var + eps)).reshape(1, -1, 1, 1)
    y = y * s + b
    if has_relu:
        y = jnp.maximum(y, 0.0)
    return y


if __name__ == "__main__":
    # Conv_BN_ReLU(in_channel=4, out_channel=8, k_size=3, stride=1, padding=1)
    N, C, H, W = 2, 4, 16, 16
    OC, KS, STRIDE, PAD = 8, 3, 1, 1

    key = jax.random.PRNGKey(0)
    kx, kw, kg, kb, km, kv = jax.random.split(key, 6)

    x = jax.random.normal(kx, (N, C, H, W), dtype=jnp.float32)
    # gaussian_init=True -> N(0, 0.01) conv weight, bias=False
    conv_w = 0.01 * jax.random.normal(kw, (OC, C, KS, KS), dtype=jnp.float32)
    bn_gamma = 1.0 + 0.1 * jax.random.normal(kg, (OC,), dtype=jnp.float32)
    bn_beta = 0.1 * jax.random.normal(kb, (OC,), dtype=jnp.float32)
    bn_mean = 0.05 * jax.random.normal(km, (OC,), dtype=jnp.float32)
    bn_var = jnp.abs(1.0 + 0.1 * jax.random.normal(kv, (OC,), dtype=jnp.float32))

    out = conv_bn_relu(x, conv_w, bn_gamma, bn_beta, bn_mean, bn_var,
                       stride=STRIDE, padding=PAD,
                       has_bn=True, has_relu=True)
    out = jax.block_until_ready(out)
    assert out.shape == (N, OC, H, W), out.shape

    # Tight check vs. a reference using identical bf16 operand rounding.
    ref_bf16 = _reference_bf16(x, conv_w, bn_gamma, bn_beta, bn_mean, bn_var,
                               stride=STRIDE, padding=PAD, eps=1e-5,
                               has_relu=True)
    assert jnp.allclose(out, ref_bf16, atol=2e-4, rtol=2e-4), \
        "mismatch vs bf16-rounded reference"

    # Looser semantic check vs. the pure fp32 PyTorch-equivalent reference
    # (difference is only bf16 input/weight rounding).
    ref_f32 = _reference_f32(x, conv_w, bn_gamma, bn_beta, bn_mean, bn_var,
                             stride=STRIDE, padding=PAD, eps=1e-5,
                             has_relu=True)
    assert jnp.allclose(out, ref_f32, atol=1e-2, rtol=1e-2), \
        "mismatch vs fp32 reference"

    print("KERNEL_OK")
</pallas_src>

<mosaic_0001>
module attributes {stable_mosaic.version = 11 : i64} {
  func.func @_conv_bn_relu_kernel(%arg0: i32, %arg1: i32, %arg2: i32, %arg3: memref<512x128xbf16, #tpu.memory_space<vmem>>, %arg4: memref<128x128xbf16, #tpu.memory_space<vmem>>, %arg5: memref<1x128xf32, #tpu.memory_space<vmem>>, %arg6: memref<512x128xf32, #tpu.memory_space<vmem>>, %arg7: memref<512x128xf32, #tpu.memory_space<vmem>>) attributes {dimension_semantics = [#tpu.dimension_semantics<parallel>, #tpu.dimension_semantics<parallel>, #tpu.dimension_semantics<arbitrary>], iteration_bounds = array<i64: 1, 1, 1>, scalar_prefetch = 0 : i64, scratch_operands = 1 : i64, tpu.core_type = #tpu.core_type<tc>, window_params = [{transform_indices = @transform_0, window_bounds = array<i64: 512, 128>}, {transform_indices = @transform_1, window_bounds = array<i64: 128, 128>}, {transform_indices = @transform_2, window_bounds = array<i64: 1, 128>}, {transform_indices = @transform_3, window_bounds = array<i64: 512, 128>}]} {
    %c0_i32 = arith.constant 0 : i32
    %0 = arith.cmpi eq, %arg2, %c0_i32 : i32
    %1 = arith.extui %0 : i1 to i32
    %c0_i32_0 = arith.constant 0 : i32
    %2 = arith.cmpi ne, %1, %c0_i32_0 : i32
    scf.if %2 {
      %cst_10 = arith.constant 0.000000e+00 : f32
      %12 = vector.broadcast %cst_10 : f32 to vector<512x128xf32>
      %c0_11 = arith.constant 0 : index
      %c0_12 = arith.constant 0 : index
      %13 = vector.load %arg7[%c0_11, %c0_12] : memref<512x128xf32, #tpu.memory_space<vmem>>, vector<512x128xf32>
      tpu.vector_store %arg7[%c0_11, %c0_12], %12 {strides = array<i32>} : memref<512x128xf32, #tpu.memory_space<vmem>>, vector<512x128xf32>,
    } else {
    }
    %c0 = arith.constant 0 : index
    %c0_1 = arith.constant 0 : index
    %3 = vector.load %arg7[%c0, %c0_1] : memref<512x128xf32, #tpu.memory_space<vmem>>, vector<512x128xf32>
    %c0_2 = arith.constant 0 : index
    %c0_3 = arith.constant 0 : index
    %4 = vector.load %arg3[%c0_2, %c0_3] : memref<512x128xbf16, #tpu.memory_space<vmem>>, vector<512x128xbf16>
    %c0_4 = arith.constant 0 : index
    %c0_5 = arith.constant 0 : index
    %5 = vector.load %arg4[%c0_4, %c0_5] : memref<128x128xbf16, #tpu.memory_space<vmem>>, vector<128x128xbf16>
    %cst = arith.constant dense<0.000000e+00> : vector<512x128xf32>
    %6 = tpu.matmul %4, %5, %cst {dimension_numbers = #tpu.dot_dimension_numbers<[1], [0], [0], [1], [0, 0, 1, 1], [], []>} : vector<512x128xbf16>, vector<128x128xbf16>, vector<512x128xf32> -> vector<512x128xf32>
    %7 = arith.addf %3, %6 : vector<512x128xf32>
    %c0_6 = arith.constant 0 : index
    %c0_7 = arith.constant 0 : index
    %8 = vector.load %arg7[%c0_6, %c0_7] : memref<512x128xf32, #tpu.memory_space<vmem>>, vector<512x128xf32>
    tpu.vector_store %arg7[%c0_6, %c0_7], %7 {strides = array<i32>} : memref<512x128xf32, #tpu.memory_space<vmem>>, vector<512x128xf32>,
    %c0_i32_8 = arith.constant 0 : i32
    %9 = arith.cmpi eq, %arg2, %c0_i32_8 : i32
    %10 = arith.extui %9 : i1 to i32
    %c0_i32_9 = arith.constant 0 : i32
    %11 = arith.cmpi ne, %10, %c0_i32_9 : i32
    scf.if %11 {
      %c0_10 = arith.constant 0 : index
      %c0_11 = arith.constant 0 : index
      %12 = vector.load %arg7[%c0_10, %c0_11] : memref<512x128xf32, #tpu.memory_space<vmem>>, vector<512x128xf32>
      %c0_12 = arith.constant 0 : index
      %c0_13 = arith.constant 0 : index
      %13 = vector.load %arg5[%c0_12, %c0_13] : memref<1x128xf32, #tpu.memory_space<vmem>>, vector<1x128xf32>
      %14 = vector.broadcast %13 : vector<1x128xf32> to vector<512x128xf32>
      %15 = arith.addf %12, %14 : vector<512x128xf32>
      %cst_14 = arith.constant 0.000000e+00 : f32
      %16 = vector.broadcast %cst_14 : f32 to vector<512x128xf32>
      %17 = arith.maximumf %15, %16 : vector<512x128xf32>
      %c0_15 = arith.constant 0 : index
      %c0_16 = arith.constant 0 : index
      %18 = vector.load %arg6[%c0_15, %c0_16] : memref<512x128xf32, #tpu.memory_space<vmem>>, vector<512x128xf32>
      tpu.vector_store %arg6[%c0_15, %c0_16], %17 {strides = array<i32>} : memref<512x128xf32, #tpu.memory_space<vmem>>, vector<512x128xf32>,
    } else {
    }
    return
  }
  func.func @transform_0(%arg0: i32, %arg1: i32, %arg2: i32) -> (i32, i32) {
    %c0_i32 = arith.constant 0 : i32
    return %arg0, %arg2 : i32, i32
  }
  func.func @transform_1(%arg0: i32, %arg1: i32, %arg2: i32) -> (i32, i32) {
    %c0_i32 = arith.constant 0 : i32
    return %arg2, %arg1 : i32, i32
  }
  func.func @transform_2(%arg0: i32, %arg1: i32, %arg2: i32) -> (i32, i32) {
    %c0_i32 = arith.constant 0 : i32
    %c0_i32_0 = arith.constant 0 : i32
    return %c0_i32, %arg1 : i32, i32
  }
  func.func @transform_3(%arg0: i32, %arg1: i32, %arg2: i32) -> (i32, i32) {
    %c0_i32 = arith.constant 0 : i32
    return %arg0, %arg1 : i32, i32
  }
}

</mosaic_0001>

<bundles_post_ra>
// kernel: tpu_custom_call.1
= control target key start
LH: loop header
LB: loop body
LE: loop exit
PB: predicated region body
PF: predicated region fallthrough
CT: control target
= control target key end

     0   :  { %8 = vsyncpa [#allocation4], 0  ;;  %s1494_s0 = inlined_call_operand.hbm [shape: bf16[512,128], index: 0, kind: input, shape index: {}]   ;;  %s1495_s1 = inlined_call_operand.hbm [shape: bf16[128,128], index: 1, kind: input, shape index: {}]   ;;  %s1496_s2 = inlined_call_operand.vmem [shape: f32[1,128], index: 2, kind: input, shape index: {}]   ;;  %s1497_s3 = inlined_call_operand.hbm [shape: f32[512,128], index: 3, kind: output, shape index: {}]  }
   0x1   :  { %9 = vsyncpa [#allocation7], 0 }
   0x2   :  { %10 = vsyncpa [#allocation5], 0  ;;  %s15_s14 = sshll.u32 %s1494_s0, 4  ;;  %s1389_s15 = smov [#allocation3]   ;;  %s16_s14 = int_to_ptr.hbm [resolvable:$true] %s15_s14 }
   0x3   :  { %s17_s16 = sshll.u32 %s1389_s15, 4  ;;  %s28_s19 = sshll.u32 %s1495_s1, 4  ;;  %s18_s16 = int_to_ptr.vmem [resolvable:$true] %s17_s16  ;;  %s29_s19 = int_to_ptr.hbm [resolvable:$true] %s28_s19 }
   0x4   :  { %s1390_s20 = smov 64   ;;  %s1391_s21 = smov 4  }
   0x5   :  { %23 = dma.hbm_to_vmem [thread:$0]  %s16_s14, 4096, %s18_s16, [#allocation4], %s1390_s20, %s1390_s20, %s1391_s21  }
   0x6   :  { %s1392_s22 = smov [#allocation6]  }
   0x7   :  { %s30_s23 = sshll.u32 %s1392_s22, 4  ;;  %s31_s23 = int_to_ptr.vmem [resolvable:$true] %s30_s23 }
   0x8   :  { %36 = dma.hbm_to_vmem [thread:$0]  %s29_s19, 1024, %s31_s23, [#allocation7], %s1390_s20, %s1390_s20, %s1391_s21  }
   0x9   :  { %1383 = dma.done.wait [#allocation4], 4096  }
   0xa   :  { %1384 = vsyncadd [#allocation4], 4294963200 }
   0xb   :  { %1385 = dma.done.wait [#allocation7], 1024  }
   0xc   :  { %1386 = vsyncadd [#allocation7], 4294966272  ;;  %v1278_v0 = vld [vmem:[#allocation6 + $0x38] sm:$0xff]  ;;  %v1277_v1 = vld [vmem:[#allocation6 + $0x30] sm:$0xff]  ;;  %s1065_s27 = sshll.u32 %s1497_s3, 4  ;;  %s1394_s28 = smov 128   ;;  %s1066_s27 = int_to_ptr.hbm [resolvable:$true] %s1065_s27 }
   0xd   :  { %499 = vmatpush.bf16.msra.mxu0 %v1278_v0  ;;  %1279 = vmatpush.bf16.msra.mxu1 %v1278_v0  ;;  %v1276_v2 = vld [vmem:[#allocation6 + $0x28] sm:$0xff]  ;;  %v1275_v3 = vld [vmem:[#allocation6 + $0x20] sm:$0xff]  ;;  %v1274_v4 = vld [vmem:[#allocation6 + $0x18] sm:$0xff]  ;;  %s1395_s29 = smov 8  }
   0xe   :  { %1280 = vmatpush.bf16.msra.mxu2 %v1278_v0  ;;  %1281 = vmatpush.bf16.msra.mxu3 %v1278_v0  ;;  %v1273_v5 = vld [vmem:[#allocation6 + $0x10] sm:$0xff]  ;;  %v1272_v6 = vld [vmem:[#allocation6 + $0x8] sm:$0xff]  ;;  %v1271_v7 = vld [vmem:[#allocation6] sm:$0xff] }
   0xf   :  { %v1239_v8 = vld [vmem:[#allocation3] sm:$0xff]  ;;  %v1240_v12 = vld [vmem:[#allocation3 + $0x8] sm:$0xff]  ;;  %v1241_v16 = vld [vmem:[#allocation3 + $0x10] sm:$0xff] }
  0x10   :  { %v1247_v9 = vld [vmem:[#allocation3 + $0x40] sm:$0xff]  ;;  %v1248_v13 = vld [vmem:[#allocation3 + $0x48] sm:$0xff]  ;;  %v1249_v17 = vld [vmem:[#allocation3 + $0x50] sm:$0xff] }
  0x11   :  { %500 = vmatpush.bf16.msra.mxu0 %v1277_v1  ;;  %1282 = vmatpush.bf16.msra.mxu1 %v1277_v1  ;;  %v1255_v10 = vld [vmem:[#allocation3 + $0x80] sm:$0xff]  ;;  %v1256_v14 = vld [vmem:[#allocation3 + $0x88] sm:$0xff]  ;;  %v1257_v18 = vld [vmem:[#allocation3 + $0x90] sm:$0xff] }
  0x12   :  { %1283 = vmatpush.bf16.msra.mxu2 %v1277_v1  ;;  %1284 = vmatpush.bf16.msra.mxu3 %v1277_v1  ;;  %v1263_v11 = vld [vmem:[#allocation3 + $0xc0] sm:$0xff]  ;;  %v1264_v15 = vld [vmem:[#allocation3 + $0xc8] sm:$0xff]  ;;  %v1265_v19 = vld [vmem:[#allocation3 + $0xd0] sm:$0xff] }
  0x13   :  { %v1242_v20 = vld [vmem:[#allocation3 + $0x18] sm:$0xff]  ;;  %v1243_v24 = vld [vmem:[#allocation3 + $0x20] sm:$0xff]  ;;  %v1244_v28 = vld [vmem:[#allocation3 + $0x28] sm:$0xff] }
  0x14   :  { %v1250_v21 = vld [vmem:[#allocation3 + $0x58] sm:$0xff]  ;;  %v1251_v25 = vld [vmem:[#allocation3 + $0x60] sm:$0xff]  ;;  %v1252_v29 = vld [vmem:[#allocation3 + $0x68] sm:$0xff] }
  0x15   :  { %501 = vmatpush.bf16.msra.mxu0 %v1276_v2  ;;  %1285 = vmatpush.bf16.msra.mxu1 %v1276_v2  ;;  %v1258_v22 = vld [vmem:[#allocation3 + $0x98] sm:$0xff]  ;;  %v1259_v26 = vld [vmem:[#allocation3 + $0xa0] sm:$0xff]  ;;  %v1260_v30 = vld [vmem:[#allocation3 + $0xa8] sm:$0xff] }
  0x16   :  { %1286 = vmatpush.bf16.msra.mxu2 %v1276_v2  ;;  %1287 = vmatpush.bf16.msra.mxu3 %v1276_v2  ;;  %v1266_v23 = vld [vmem:[#allocation3 + $0xd8] sm:$0xff]  ;;  %v1267_v27 = vld [vmem:[#allocation3 + $0xe0] sm:$0xff]  ;;  %v1268_v31 = vld [vmem:[#allocation3 + $0xe8] sm:$0xff] }
  0x17   :  { %v1245_v32 = vld [vmem:[#allocation3 + $0x30] sm:$0xff]  ;;  %v1246_v36 = vld [vmem:[#allocation3 + $0x38] sm:$0xff]  ;;  %v1425_v40 = vld [vmem:[%s1496_s2] ss:$0 sm:$0xff]  ;;  %s1393_s2 = smov [#allocation8]  }
  0x18   :  { %v1253_v33 = vld [vmem:[#allocation3 + $0x70] sm:$0xff]  ;;  %v1254_v37 = vld [vmem:[#allocation3 + $0x78] sm:$0xff]  ;;  %s1063_s24 = sshll.u32 %s1393_s2, 4  ;;  %s1064_s24 = int_to_ptr.vmem [resolvable:$true] %s1063_s24 }
  0x19   :  { %502 = vmatpush.bf16.msra.mxu0 %v1275_v3  ;;  %1288 = vmatpush.bf16.msra.mxu1 %v1275_v3  ;;  %v1261_v34 = vld [vmem:[#allocation3 + $0xb0] sm:$0xff]  ;;  %v1262_v38 = vld [vmem:[#allocation3 + $0xb8] sm:$0xff] }
  0x1a   :  { %1289 = vmatpush.bf16.msra.mxu2 %v1275_v3  ;;  %1290 = vmatpush.bf16.msra.mxu3 %v1275_v3  ;;  %v1269_v35 = vld [vmem:[#allocation3 + $0xf0] sm:$0xff]  ;;  %v1270_v39 = vld [vmem:[#allocation3 + $0xf8] sm:$0xff] }
  0x1d   :  { %503 = vmatpush.bf16.msra.mxu0 %v1274_v4  ;;  %1291 = vmatpush.bf16.msra.mxu1 %v1274_v4 }
  0x1e   :  { %1292 = vmatpush.bf16.msra.mxu2 %v1274_v4  ;;  %1293 = vmatpush.bf16.msra.mxu3 %v1274_v4 }
  0x21   :  { %504 = vmatpush.bf16.msra.mxu0 %v1273_v5  ;;  %1294 = vmatpush.bf16.msra.mxu1 %v1273_v5 }
  0x22   :  { %1295 = vmatpush.bf16.msra.mxu2 %v1273_v5  ;;  %1296 = vmatpush.bf16.msra.mxu3 %v1273_v5 }
  0x25   :  { %505 = vmatpush.bf16.msra.mxu0 %v1272_v6  ;;  %1297 = vmatpush.bf16.msra.mxu1 %v1272_v6 }
  0x26   :  { %1298 = vmatpush.bf16.msra.mxu2 %v1272_v6  ;;  %1299 = vmatpush.bf16.msra.mxu3 %v1272_v6 }
  0x29   :  { %506 = vmatpush.bf16.msra.mxu0 %v1271_v7  ;;  %1300 = vmatpush.bf16.msra.mxu1 %v1271_v7 }
  0x2a   :  { %1301 = vmatpush.bf16.msra.mxu2 %v1271_v7  ;;  %1302 = vmatpush.bf16.msra.mxu3 %v1271_v7 }
  0x2c   :  { %507 = vmatmul.bf16.vlgmr.msra.gmra.mxu0 %v1239_v8  ;;  %547 = vmatmul.bf16.vlgmr.msra.gmra.mxu1 %v1247_v9 }
  0x2d   :  { %587 = vmatmul.bf16.vlgmr.msra.gmra.mxu2 %v1255_v10  ;;  %627 = vmatmul.bf16.vlgmr.msra.gmra.mxu3 %v1263_v11 }
  0x3c   :  { %512 = vmatmul.bf16.gmra.mxu0 %v1240_v12  ;;  %552 = vmatmul.bf16.gmra.mxu1 %v1248_v13 }
  0x3d   :  { %592 = vmatmul.bf16.gmra.mxu2 %v1256_v14  ;;  %632 = vmatmul.bf16.gmra.mxu3 %v1264_v15 }
  0x4c   :  { %517 = vmatmul.bf16.gmra.mxu0 %v1241_v16  ;;  %557 = vmatmul.bf16.gmra.mxu1 %v1249_v17 }
  0x4d   :  { %597 = vmatmul.bf16.gmra.mxu2 %v1257_v18  ;;  %637 = vmatmul.bf16.gmra.mxu3 %v1265_v19 }
  0x5c   :  { %522 = vmatmul.bf16.gmra.mxu0 %v1242_v20  ;;  %562 = vmatmul.bf16.gmra.mxu1 %v1250_v21 }
  0x5d   :  { %602 = vmatmul.bf16.gmra.mxu2 %v1258_v22  ;;  %642 = vmatmul.bf16.gmra.mxu3 %v1266_v23 }
  0x6c   :  { %527 = vmatmul.bf16.gmra.mxu0 %v1243_v24  ;;  %567 = vmatmul.bf16.gmra.mxu1 %v1251_v25 }
  0x6d   :  { %607 = vmatmul.bf16.gmra.mxu2 %v1259_v26  ;;  %647 = vmatmul.bf16.gmra.mxu3 %v1267_v27 }
  0x7c   :  { %532 = vmatmul.bf16.gmra.mxu0 %v1244_v28  ;;  %572 = vmatmul.bf16.gmra.mxu1 %v1252_v29 }
  0x7d   :  { %612 = vmatmul.bf16.gmra.mxu2 %v1260_v30  ;;  %652 = vmatmul.bf16.gmra.mxu3 %v1268_v31 }
  0x8c   :  { %537 = vmatmul.bf16.gmra.mxu0 %v1245_v32  ;;  %577 = vmatmul.bf16.gmra.mxu1 %v1253_v33 }
  0x8d   :  { %617 = vmatmul.bf16.gmra.mxu2 %v1261_v34  ;;  %657 = vmatmul.bf16.gmra.mxu3 %v1269_v35 }
  0x9c   :  { %542 = vmatmul.bf16.gmra.mxu0 %v1246_v36  ;;  %582 = vmatmul.bf16.gmra.mxu1 %v1254_v37 }
  0x9d   :  { %622 = vmatmul.bf16.gmra.mxu2 %v1262_v38  ;;  %662 = vmatmul.bf16.gmra.mxu3 %v1270_v39 }
  0xa9   :  { %v508_v41 = vpop.f32.mrf.mxu0  ;;  %v548_v42 = vpop.f32.mrf.mxu1 }
  0xaa   :  { %v867_v43 = vadd.f32 %v1425_v40, %v508_v41  ;;  %v883_v44 = vadd.f32 %v1425_v40, %v548_v42 }
  0xac   :  { %v931_v45 = vmax.f32 %v867_v43, 0.0  ;;  %v947_v46 = vmax.f32 %v883_v44, 0.0 }
  0xae   :  { %995 = vst [vmem:[#allocation8] sm:$0xff] %v931_v45 }
  0xaf   :  { %1011 = vst [vmem:[#allocation8 + $0x80] sm:$0xff] %v947_v46 }
  0xb0   :  { %v588_v47 = vpop.f32.mrf.mxu2  ;;  %v628_v48 = vpop.f32.mrf.mxu3 }
  0xb1   :  { %v899_v49 = vadd.f32 %v1425_v40, %v588_v47  ;;  %v915_v50 = vadd.f32 %v1425_v40, %v628_v48  ;;  %v510_v51 = vpop.f32.mrf.mxu0  ;;  %v550_v52 = vpop.f32.mrf.mxu1 }
  0xb2   :  { %v868_v53 = vadd.f32 %v1425_v40, %v510_v51  ;;  %v884_v54 = vadd.f32 %v1425_v40, %v550_v52 }
  0xb3   :  { %v963_v55 = vmax.f32 %v899_v49, 0.0  ;;  %v979_v56 = vmax.f32 %v915_v50, 0.0 }
  0xb4   :  { %v932_v57 = vmax.f32 %v868_v53, 0.0  ;;  %v948_v58 = vmax.f32 %v884_v54, 0.0 }
  0xb5   :  { %1027 = vst [vmem:[#allocation8 + $0x100] sm:$0xff] %v963_v55 }
  0xb6   :  { %1043 = vst [vmem:[#allocation8 + $0x180] sm:$0xff] %v979_v56 }
  0xb7   :  { %996 = vst [vmem:[#allocation8 + $0x8] sm:$0xff] %v932_v57 }
  0xb8   :  { %1012 = vst [vmem:[#allocation8 + $0x88] sm:$0xff] %v948_v58  ;;  %v590_v59 = vpop.f32.mrf.mxu2  ;;  %v630_v60 = vpop.f32.mrf.mxu3 }
  0xb9   :  { %v900_v61 = vadd.f32 %v1425_v40, %v590_v59  ;;  %v916_v62 = vadd.f32 %v1425_v40, %v630_v60  ;;  %v513_v63 = vpop.f32.mrf.mxu0  ;;  %v553_v0 = vpop.f32.mrf.mxu1 }
  0xba   :  { %v869_v1 = vadd.f32 %v1425_v40, %v513_v63  ;;  %v885_v2 = vadd.f32 %v1425_v40, %v553_v0 }
  0xbb   :  { %v964_v3 = vmax.f32 %v900_v61, 0.0  ;;  %v980_v4 = vmax.f32 %v916_v62, 0.0 }
  0xbc   :  { %v933_v5 = vmax.f32 %v869_v1, 0.0  ;;  %v949_v6 = vmax.f32 %v885_v2, 0.0 }
  0xbd   :  { %1028 = vst [vmem:[#allocation8 + $0x108] sm:$0xff] %v964_v3 }
  0xbe   :  { %1044 = vst [vmem:[#allocation8 + $0x188] sm:$0xff] %v980_v4 }
  0xbf   :  { %997 = vst [vmem:[#allocation8 + $0x10] sm:$0xff] %v933_v5 }
  0xc0   :  { %1013 = vst [vmem:[#allocation8 + $0x90] sm:$0xff] %v949_v6  ;;  %v593_v7 = vpop.f32.mrf.mxu2  ;;  %v633_v8 = vpop.f32.mrf.mxu3 }
  0xc1   :  { %v901_v9 = vadd.f32 %v1425_v40, %v593_v7  ;;  %v917_v10 = vadd.f32 %v1425_v40, %v633_v8  ;;  %v515_v11 = vpop.f32.mrf.mxu0  ;;  %v555_v12 = vpop.f32.mrf.mxu1 }
  0xc2   :  { %v870_v13 = vadd.f32 %v1425_v40, %v515_v11  ;;  %v886_v14 = vadd.f32 %v1425_v40, %v555_v12 }
  0xc3   :  { %v965_v15 = vmax.f32 %v901_v9, 0.0  ;;  %v981_v16 = vmax.f32 %v917_v10, 0.0 }
  0xc4   :  { %v934_v17 = vmax.f32 %v870_v13, 0.0  ;;  %v950_v18 = vmax.f32 %v886_v14, 0.0 }
  0xc5   :  { %1029 = vst [vmem:[#allocation8 + $0x110] sm:$0xff] %v965_v15 }
  0xc6   :  { %1045 = vst [vmem:[#allocation8 + $0x190] sm:$0xff] %v981_v16 }
  0xc7   :  { %998 = vst [vmem:[#allocation8 + $0x18] sm:$0xff] %v934_v17 }
  0xc8   :  { %1014 = vst [vmem:[#allocation8 + $0x98] sm:$0xff] %v950_v18  ;;  %v595_v19 = vpop.f32.mrf.mxu2  ;;  %v635_v20 = vpop.f32.mrf.mxu3 }
  0xc9   :  { %v902_v21 = vadd.f32 %v1425_v40, %v595_v19  ;;  %v918_v22 = vadd.f32 %v1425_v40, %v635_v20  ;;  %v518_v23 = vpop.f32.mrf.mxu0  ;;  %v558_v24 = vpop.f32.mrf.mxu1 }
  0xca   :  { %v871_v25 = vadd.f32 %v1425_v40, %v518_v23  ;;  %v887_v26 = vadd.f32 %v1425_v40, %v558_v24 }
  0xcb   :  { %v966_v27 = vmax.f32 %v902_v21, 0.0  ;;  %v982_v28 = vmax.f32 %v918_v22, 0.0 }
  0xcc   :  { %v935_v29 = vmax.f32 %v871_v25, 0.0  ;;  %v951_v30 = vmax.f32 %v887_v26, 0.0 }
  0xcd   :  { %1030 = vst [vmem:[#allocation8 + $0x118] sm:$0xff] %v966_v27 }
  0xce   :  { %1046 = vst [vmem:[#allocation8 + $0x198] sm:$0xff] %v982_v28 }
  0xcf   :  { %999 = vst [vmem:[#allocation8 + $0x20] sm:$0xff] %v935_v29 }
  0xd0   :  { %1015 = vst [vmem:[#allocation8 + $0xa0] sm:$0xff] %v951_v30  ;;  %v598_v31 = vpop.f32.mrf.mxu2  ;;  %v638_v32 = vpop.f32.mrf.mxu3 }
  0xd1   :  { %v903_v33 = vadd.f32 %v1425_v40, %v598_v31  ;;  %v919_v34 = vadd.f32 %v1425_v40, %v638_v32  ;;  %v520_v35 = vpop.f32.mrf.mxu0  ;;  %v560_v36 = vpop.f32.mrf.mxu1 }
  0xd2   :  { %v872_v37 = vadd.f32 %v1425_v40, %v520_v35  ;;  %v888_v38 = vadd.f32 %v1425_v40, %v560_v36 }
  0xd3   :  { %v967_v39 = vmax.f32 %v903_v33, 0.0  ;;  %v983_v41 = vmax.f32 %v919_v34, 0.0 }
  0xd4   :  { %v936_v42 = vmax.f32 %v872_v37, 0.0  ;;  %v952_v43 = vmax.f32 %v888_v38, 0.0 }
  0xd5   :  { %1031 = vst [vmem:[#allocation8 + $0x120] sm:$0xff] %v967_v39 }
  0xd6   :  { %1047 = vst [vmem:[#allocation8 + $0x1a0] sm:$0xff] %v983_v41 }
  0xd7   :  { %1000 = vst [vmem:[#allocation8 + $0x28] sm:$0xff] %v936_v42 }
  0xd8   :  { %1016 = vst [vmem:[#allocation8 + $0xa8] sm:$0xff] %v952_v43  ;;  %v600_v44 = vpop.f32.mrf.mxu2  ;;  %v640_v45 = vpop.f32.mrf.mxu3 }
  0xd9   :  { %v904_v46 = vadd.f32 %v1425_v40, %v600_v44  ;;  %v920_v47 = vadd.f32 %v1425_v40, %v640_v45  ;;  %v523_v48 = vpop.f32.mrf.mxu0  ;;  %v563_v49 = vpop.f32.mrf.mxu1 }
  0xda   :  { %v873_v50 = vadd.f32 %v1425_v40, %v523_v48  ;;  %v889_v51 = vadd.f32 %v1425_v40, %v563_v49 }
  0xdb   :  { %v968_v52 = vmax.f32 %v904_v46, 0.0  ;;  %v984_v53 = vmax.f32 %v920_v47, 0.0 }
  0xdc   :  { %v937_v54 = vmax.f32 %v873_v50, 0.0  ;;  %v953_v55 = vmax.f32 %v889_v51, 0.0 }
  0xdd   :  { %1032 = vst [vmem:[#allocation8 + $0x128] sm:$0xff] %v968_v52 }
  0xde   :  { %1048 = vst [vmem:[#allocation8 + $0x1a8] sm:$0xff] %v984_v53 }
  0xdf   :  { %1001 = vst [vmem:[#allocation8 + $0x30] sm:$0xff] %v937_v54 }
  0xe0   :  { %1017 = vst [vmem:[#allocation8 + $0xb0] sm:$0xff] %v953_v55  ;;  %v603_v56 = vpop.f32.mrf.mxu2  ;;  %v643_v57 = vpop.f32.mrf.mxu3 }
  0xe1   :  { %v905_v58 = vadd.f32 %v1425_v40, %v603_v56  ;;  %v921_v59 = vadd.f32 %v1425_v40, %v643_v57  ;;  %v525_v60 = vpop.f32.mrf.mxu0  ;;  %v565_v61 = vpop.f32.mrf.mxu1 }
  0xe2   :  { %v874_v62 = vadd.f32 %v1425_v40, %v525_v60  ;;  %v890_v63 = vadd.f32 %v1425_v40, %v565_v61 }
  0xe3   :  { %v969_v0 = vmax.f32 %v905_v58, 0.0  ;;  %v985_v1 = vmax.f32 %v921_v59, 0.0 }
  0xe4   :  { %v938_v2 = vmax.f32 %v874_v62, 0.0  ;;  %v954_v3 = vmax.f32 %v890_v63, 0.0 }
  0xe5   :  { %1033 = vst [vmem:[#allocation8 + $0x130] sm:$0xff] %v969_v0 }
  0xe6   :  { %1049 = vst [vmem:[#allocation8 + $0x1b0] sm:$0xff] %v985_v1 }
  0xe7   :  { %1002 = vst [vmem:[#allocation8 + $0x38] sm:$0xff] %v938_v2 }
  0xe8   :  { %1018 = vst [vmem:[#allocation8 + $0xb8] sm:$0xff] %v954_v3  ;;  %v605_v4 = vpop.f32.mrf.mxu2  ;;  %v645_v5 = vpop.f32.mrf.mxu3 }
  0xe9   :  { %v906_v6 = vadd.f32 %v1425_v40, %v605_v4  ;;  %v922_v7 = vadd.f32 %v1425_v40, %v645_v5  ;;  %v528_v8 = vpop.f32.mrf.mxu0  ;;  %v568_v9 = vpop.f32.mrf.mxu1 }
  0xea   :  { %v875_v10 = vadd.f32 %v1425_v40, %v528_v8  ;;  %v891_v11 = vadd.f32 %v1425_v40, %v568_v9 }
  0xeb   :  { %v970_v12 = vmax.f32 %v906_v6, 0.0  ;;  %v986_v13 = vmax.f32 %v922_v7, 0.0 }
  0xec   :  { %v939_v14 = vmax.f32 %v875_v10, 0.0  ;;  %v955_v15 = vmax.f32 %v891_v11, 0.0 }
  0xed   :  { %1034 = vst [vmem:[#allocation8 + $0x138] sm:$0xff] %v970_v12 }
  0xee   :  { %1050 = vst [vmem:[#allocation8 + $0x1b8] sm:$0xff] %v986_v13 }
  0xef   :  { %1003 = vst [vmem:[#allocation8 + $0x40] sm:$0xff] %v939_v14 }
  0xf0   :  { %1019 = vst [vmem:[#allocation8 + $0xc0] sm:$0xff] %v955_v15  ;;  %v608_v16 = vpop.f32.mrf.mxu2  ;;  %v648_v17 = vpop.f32.mrf.mxu3 }
  0xf1   :  { %v907_v18 = vadd.f32 %v1425_v40, %v608_v16  ;;  %v923_v19 = vadd.f32 %v1425_v40, %v648_v17  ;;  %v530_v20 = vpop.f32.mrf.mxu0  ;;  %v570_v21 = vpop.f32.mrf.mxu1 }
  0xf2   :  { %v876_v22 = vadd.f32 %v1425_v40, %v530_v20  ;;  %v892_v23 = vadd.f32 %v1425_v40, %v570_v21 }
  0xf3   :  { %v971_v24 = vmax.f32 %v907_v18, 0.0  ;;  %v987_v25 = vmax.f32 %v923_v19, 0.0 }
  0xf4   :  { %v940_v26 = vmax.f32 %v876_v22, 0.0  ;;  %v956_v27 = vmax.f32 %v892_v23, 0.0 }
  0xf5   :  { %1035 = vst [vmem:[#allocation8 + $0x140] sm:$0xff] %v971_v24 }
  0xf6   :  { %1051 = vst [vmem:[#allocation8 + $0x1c0] sm:$0xff] %v987_v25 }
  0xf7   :  { %1004 = vst [vmem:[#allocation8 + $0x48] sm:$0xff] %v940_v26 }
  0xf8   :  { %1020 = vst [vmem:[#allocation8 + $0xc8] sm:$0xff] %v956_v27  ;;  %v610_v28 = vpop.f32.mrf.mxu2  ;;  %v650_v29 = vpop.f32.mrf.mxu3 }
  0xf9   :  { %v908_v30 = vadd.f32 %v1425_v40, %v610_v28  ;;  %v924_v31 = vadd.f32 %v1425_v40, %v650_v29  ;;  %v533_v32 = vpop.f32.mrf.mxu0  ;;  %v573_v33 = vpop.f32.mrf.mxu1 }
  0xfa   :  { %v877_v34 = vadd.f32 %v1425_v40, %v533_v32  ;;  %v893_v35 = vadd.f32 %v1425_v40, %v573_v33 }
  0xfb   :  { %v972_v36 = vmax.f32 %v908_v30, 0.0  ;;  %v988_v37 = vmax.f32 %v924_v31, 0.0 }
  0xfc   :  { %v941_v38 = vmax.f32 %v877_v34, 0.0  ;;  %v957_v39 = vmax.f32 %v893_v35, 0.0 }
  0xfd   :  { %1036 = vst [vmem:[#allocation8 + $0x148] sm:$0xff] %v972_v36 }
  0xfe   :  { %1052 = vst [vmem:[#allocation8 + $0x1c8] sm:$0xff] %v988_v37 }
  0xff   :  { %1005 = vst [vmem:[#allocation8 + $0x50] sm:$0xff] %v941_v38 }
 0x100   :  { %1021 = vst [vmem:[#allocation8 + $0xd0] sm:$0xff] %v957_v39  ;;  %v613_v41 = vpop.f32.mrf.mxu2  ;;  %v653_v42 = vpop.f32.mrf.mxu3 }
 0x101   :  { %v909_v43 = vadd.f32 %v1425_v40, %v613_v41  ;;  %v925_v44 = vadd.f32 %v1425_v40, %v653_v42  ;;  %v535_v45 = vpop.f32.mrf.mxu0  ;;  %v575_v46 = vpop.f32.mrf.mxu1 }
 0x102   :  { %v878_v47 = vadd.f32 %v1425_v40, %v535_v45  ;;  %v894_v48 = vadd.f32 %v1425_v40, %v575_v46 }
 0x103   :  { %v973_v49 = vmax.f32 %v909_v43, 0.0  ;;  %v989_v50 = vmax.f32 %v925_v44, 0.0 }
 0x104   :  { %v942_v51 = vmax.f32 %v878_v47, 0.0  ;;  %v958_v52 = vmax.f32 %v894_v48, 0.0 }
 0x105   :  { %1037 = vst [vmem:[#allocation8 + $0x150] sm:$0xff] %v973_v49 }
 0x106   :  { %1053 = vst [vmem:[#allocation8 + $0x1d0] sm:$0xff] %v989_v50 }
 0x107   :  { %1006 = vst [vmem:[#allocation8 + $0x58] sm:$0xff] %v942_v51 }
 0x108   :  { %1022 = vst [vmem:[#allocation8 + $0xd8] sm:$0xff] %v958_v52  ;;  %v615_v53 = vpop.f32.mrf.mxu2  ;;  %v655_v54 = vpop.f32.mrf.mxu3 }
 0x109   :  { %v910_v55 = vadd.f32 %v1425_v40, %v615_v53  ;;  %v926_v56 = vadd.f32 %v1425_v40, %v655_v54  ;;  %v538_v57 = vpop.f32.mrf.mxu0  ;;  %v578_v58 = vpop.f32.mrf.mxu1 }
 0x10a   :  { %v879_v59 = vadd.f32 %v1425_v40, %v538_v57  ;;  %v895_v60 = vadd.f32 %v1425_v40, %v578_v58 }
 0x10b   :  { %v974_v61 = vmax.f32 %v910_v55, 0.0  ;;  %v990_v62 = vmax.f32 %v926_v56, 0.0 }
 0x10c   :  { %v943_v63 = vmax.f32 %v879_v59, 0.0  ;;  %v959_v0 = vmax.f32 %v895_v60, 0.0 }
 0x10d   :  { %1038 = vst [vmem:[#allocation8 + $0x158] sm:$0xff] %v974_v61 }
 0x10e   :  { %1054 = vst [vmem:[#allocation8 + $0x1d8] sm:$0xff] %v990_v62 }
 0x10f   :  { %1007 = vst [vmem:[#allocation8 + $0x60] sm:$0xff] %v943_v63 }
 0x110   :  { %1023 = vst [vmem:[#allocation8 + $0xe0] sm:$0xff] %v959_v0  ;;  %v618_v1 = vpop.f32.mrf.mxu2  ;;  %v658_v2 = vpop.f32.mrf.mxu3 }
 0x111   :  { %v911_v3 = vadd.f32 %v1425_v40, %v618_v1  ;;  %v927_v4 = vadd.f32 %v1425_v40, %v658_v2  ;;  %v540_v5 = vpop.f32.mrf.mxu0  ;;  %v580_v6 = vpop.f32.mrf.mxu1 }
 0x112   :  { %v880_v7 = vadd.f32 %v1425_v40, %v540_v5  ;;  %v896_v8 = vadd.f32 %v1425_v40, %v580_v6 }
 0x113   :  { %v975_v9 = vmax.f32 %v911_v3, 0.0  ;;  %v991_v10 = vmax.f32 %v927_v4, 0.0 }
 0x114   :  { %v944_v11 = vmax.f32 %v880_v7, 0.0  ;;  %v960_v12 = vmax.f32 %v896_v8, 0.0 }
 0x115   :  { %1039 = vst [vmem:[#allocation8 + $0x160] sm:$0xff] %v975_v9 }
 0x116   :  { %1055 = vst [vmem:[#allocation8 + $0x1e0] sm:$0xff] %v991_v10 }
 0x117   :  { %1008 = vst [vmem:[#allocation8 + $0x68] sm:$0xff] %v944_v11 }
 0x118   :  { %1024 = vst [vmem:[#allocation8 + $0xe8] sm:$0xff] %v960_v12  ;;  %v620_v13 = vpop.f32.mrf.mxu2  ;;  %v660_v14 = vpop.f32.mrf.mxu3 }
 0x119   :  { %v912_v15 = vadd.f32 %v1425_v40, %v620_v13  ;;  %v928_v16 = vadd.f32 %v1425_v40, %v660_v14  ;;  %v543_v17 = vpop.f32.mrf.mxu0  ;;  %v583_v18 = vpop.f32.mrf.mxu1 }
 0x11a   :  { %v881_v19 = vadd.f32 %v1425_v40, %v543_v17  ;;  %v897_v20 = vadd.f32 %v1425_v40, %v583_v18 }
 0x11b   :  { %v976_v21 = vmax.f32 %v912_v15, 0.0  ;;  %v992_v22 = vmax.f32 %v928_v16, 0.0 }
 0x11c   :  { %v945_v23 = vmax.f32 %v881_v19, 0.0  ;;  %v961_v24 = vmax.f32 %v897_v20, 0.0 }
 0x11d   :  { %1040 = vst [vmem:[#allocation8 + $0x168] sm:$0xff] %v976_v21 }
 0x11e   :  { %1056 = vst [vmem:[#allocation8 + $0x1e8] sm:$0xff] %v992_v22 }
 0x11f   :  { %1009 = vst [vmem:[#allocation8 + $0x70] sm:$0xff] %v945_v23 }
 0x120   :  { %1025 = vst [vmem:[#allocation8 + $0xf0] sm:$0xff] %v961_v24  ;;  %v623_v25 = vpop.f32.mrf.mxu2  ;;  %v663_v26 = vpop.f32.mrf.mxu3 }
 0x121   :  { %v913_v27 = vadd.f32 %v1425_v40, %v623_v25  ;;  %v929_v28 = vadd.f32 %v1425_v40, %v663_v26  ;;  %v545_v29 = vpop.f32.mrf.mxu0  ;;  %v585_v30 = vpop.f32.mrf.mxu1 }
 0x122   :  { %v882_v31 = vadd.f32 %v1425_v40, %v545_v29  ;;  %v898_v32 = vadd.f32 %v1425_v40, %v585_v30 }
 0x123   :  { %v977_v33 = vmax.f32 %v913_v27, 0.0  ;;  %v993_v34 = vmax.f32 %v929_v28, 0.0 }
 0x124   :  { %v946_v35 = vmax.f32 %v882_v31, 0.0  ;;  %v962_v36 = vmax.f32 %v898_v32, 0.0 }
 0x125   :  { %1041 = vst [vmem:[#allocation8 + $0x170] sm:$0xff] %v977_v33 }
 0x126   :  { %1057 = vst [vmem:[#allocation8 + $0x1f0] sm:$0xff] %v993_v34 }
 0x127   :  { %1010 = vst [vmem:[#allocation8 + $0x78] sm:$0xff] %v946_v35 }
 0x128   :  { %1026 = vst [vmem:[#allocation8 + $0xf8] sm:$0xff] %v962_v36  ;;  %v625_v37 = vpop.f32.mrf.mxu2  ;;  %v665_v38 = vpop.f32.mrf.mxu3 }
 0x129   :  { %v914_v39 = vadd.f32 %v1425_v40, %v625_v37  ;;  %v930_v41 = vadd.f32 %v1425_v40, %v665_v38 }
 0x12b   :  { %v978_v42 = vmax.f32 %v914_v39, 0.0  ;;  %v994_v43 = vmax.f32 %v930_v41, 0.0 }
 0x12d   :  { %1042 = vst [vmem:[#allocation8 + $0x178] sm:$0xff] %v978_v42 }
 0x12e   :  { %1058 = vst [vmem:[#allocation8 + $0x1f8] sm:$0xff] %v994_v43 }
 0x12f   :  { %1071 = dma.vmem_to_hbm [thread:$0]  %s1064_s24, 8192, %s1066_s27, [#allocation5], %s1394_s28, %s1394_s28, %s1395_s29  }
 0x130   :  { %1387 = dma.done.wait [#allocation5], 8192  }
 0x131   :  { %1388 = vsyncadd [#allocation5], 4294959104 }
 0x132   :  { %1076 = vsyncpa [#allocation4], 1 }
 0x133   :  { %1077 = vsyncpa [#allocation7], 1 }
 0x134   :  { %1078 = vsyncpa [#allocation5], 1 }

</bundles_post_ra>
